<compile_context>
chip_gen: v6e
topology: v6e:2x2x1
jax: 0.10.0
libtpu: 0.0.40
codegen_flags: <defaults>
</compile_context>

<pallas_src>
import math
from functools import partial

import jax
import jax.numpy as jnp
from jax import lax
from jax.experimental import pallas as pl
from jax.experimental.pallas import tpu as pltpu


def _round_up(x, m):
    return ((x + m - 1) // m) * m


def _pick_batch_tile(B, cap=512):
    """Batch tile: multiple of 16 (8 for tiny B); >=2 grid steps when B > 16 so
    the 'parallel' batch axis spans both v7x TensorCores; pad waste < 1 tile."""
    if B <= 16:
        return _round_up(B, 8)
    nsteps = max(2, pl.cdiv(B, cap))
    return min(cap, _round_up(pl.cdiv(B, nsteps), 16))


def _vmem_limit_bytes(TB, K8, H_pad, O_pad, L_spec):
    """Explicit scoped-VMEM request sized to the resident footprint + headroom."""
    weights = (K8 * H_pad + L_spec * H_pad * H_pad + H_pad * O_pad) * 2   # bf16
    biases = (H_pad * (L_spec + 1) + O_pad) * 4                           # f32
    io = 2 * (TB * K8 * 4 + TB * O_pad * 2)                               # dbl-buffered x / out tiles
    act = 4 * TB * H_pad * 4                                              # f32 temporaries headroom
    # 2x weights also covers the double-buffered fallback path.
    need = 2 * weights + biases + io + act
    return int(max(32 << 20, min(100 << 20, need + (8 << 20))))


def _normalnet_kernel(x_ref, w1_ref, b1_ref, wh_ref, bh_ref, wl_ref, bl_ref,
                      o_ref, *, num_layer, compute_dtype):
    # x tile arrives unpadded/uncast ([TB, K8] f32): cast to bf16 here (VPU)
    # instead of paying a lane-padded HBM copy pass in the wrapper.
    x = x_ref[...].astype(compute_dtype)

    # fc1_normal: MXU matmul with f32 accumulation; bias + ReLU in f32; carry bf16.
    h = jnp.dot(x, w1_ref[...], preferred_element_type=jnp.float32) + b1_ref[...]
    h = jnp.maximum(h, 0.0).astype(compute_dtype)

    # Hidden linear blocks + ReLU over the resident [L, H, H] weight stack.
    # unroll=True keeps LLO scheduler visibility while bounding live ranges.
    def body(i, h):
        hn = jnp.dot(h, wh_ref[i], preferred_element_type=jnp.float32) + bh_ref[i]
        return jnp.maximum(hn, 0.0).astype(compute_dtype)

    h = lax.fori_loop(0, num_layer, body, h, unroll=True)

    # last_normal + ReLU (h_full_activation=True); lane-dense bf16 store.
    y = jnp.dot(h, wl_ref[...], preferred_element_type=jnp.float32) + bl_ref[...]
    o_ref[...] = jnp.maximum(y, 0.0).astype(o_ref.dtype)


def prepare_params(params, *, compute_dtype=jnp.bfloat16):
    """Pad/cast weights once (cache the result across forward calls)."""
    in_dim, H = params["w1"].shape
    O = params["wl"].shape[1]
    L = params["wh"].shape[0]

    K8 = _round_up(in_dim, 8)                      # 8-aligned contraction dim (no 128 inflation)
    H_pad = _round_up(max(H, 128), 128)
    O_pad = _round_up(max(O, 128), 128)

    def pad2(a, r, c, dt):
        return jnp.pad(a, ((0, r - a.shape[0]), (0, c - a.shape[1]))).astype(dt)

    # Zero-padding is numerically exact: padded inputs/weights contribute 0 and
    # relu(0 + 0) = 0 feeds zero-weight rows/cols of the next layer.
    w1 = pad2(params["w1"], K8, H_pad, compute_dtype)
    b1 = pad2(params["b1"], 1, H_pad, jnp.float32)
    if L > 0:
        wh = jnp.pad(params["wh"],
                     ((0, 0), (0, H_pad - H), (0, H_pad - H))).astype(compute_dtype)
        bh = jnp.pad(params["bh"],
                     ((0, 0), (0, 0), (0, H_pad - H))).astype(jnp.float32)
    else:
        # num_layer == 0 edge case: keep a 1-deep dummy stack (never read).
        wh = jnp.zeros((1, H_pad, H_pad), compute_dtype)
        bh = jnp.zeros((1, 1, H_pad), jnp.float32)
    wl = pad2(params["wl"], H_pad, O_pad, compute_dtype)
    bl = pad2(params["bl"], 1, O_pad, jnp.float32)

    return {
        "w1": w1, "b1": b1, "wh": wh, "bh": bh, "wl": wl, "bl": bl,
        "meta": dict(in_dim=in_dim, K8=K8, H=H, H_pad=H_pad, O=O, O_pad=O_pad,
                     num_layer=L, compute_dtype=compute_dtype),
    }


def different_weights_normalnet(x, prepared, *, num_distribution, batch_tile_cap=512):
    meta = prepared["meta"]
    in_dim, K8 = meta["in_dim"], meta["K8"]
    H_pad, O, O_pad = meta["H_pad"], meta["O"], meta["O_pad"]
    num_layer = meta["num_layer"]
    cd = meta["compute_dtype"]
    L_spec = prepared["wh"].shape[0]

    B = x.shape[0]
    assert x.shape[1] == in_dim

    TB = _pick_batch_tile(B, cap=batch_tile_cap)
    B_pad = _round_up(B, TB)

    # Only batch rows + a handful of feature lanes (to 8-aligned K8) get padded;
    # no 128-lane inflation and no dtype-cast pass over x in HBM.
    if B_pad != B or K8 != in_dim:
        x_p = jnp.pad(x, ((0, B_pad - B), (0, K8 - in_dim)))
    else:
        x_p = x

    kernel = partial(_normalnet_kernel, num_layer=num_layer, compute_dtype=cd)
    vmem_limit = _vmem_limit_bytes(TB, K8, H_pad, O_pad, L_spec)

    # TODO(synk): for configs where L*H_pad^2 bf16 weights exceed ~16-24 MiB
    # (v7x: 64 MiB/TC, and the parallel batch axis replicates weights per TC),
    # stream wh per layer (inner "arbitrary" layer grid axis with an h carried
    # in VMEM scratch, or pltpu.emit_pipeline over wh left in HBM) instead of
    # keeping the full stack resident.
    def build(single_buffer_weights):
        def wspec(shape, idx_map):
            if single_buffer_weights:
                # Constant-index weights need only one VMEM buffer; the default
                # pipeliner would double-buffer and double resident VMEM.
                return pl.BlockSpec(shape, idx_map, pipeline_mode=pl.Buffered(1))
            return pl.BlockSpec(shape, idx_map)

        return pl.pallas_call(
            kernel,
            out_shape=jax.ShapeDtypeStruct((B_pad, O_pad), cd),
            grid=(B_pad // TB,),
            in_specs=[
                pl.BlockSpec((TB, K8), lambda i: (i, 0)),              # x: pipelined tiles
                wspec((K8, H_pad), lambda i: (0, 0)),                  # w1: resident
                wspec((1, H_pad), lambda i: (0, 0)),                   # b1
                wspec((L_spec, H_pad, H_pad), lambda i: (0, 0, 0)),    # wh stack
                wspec((L_spec, 1, H_pad), lambda i: (0, 0, 0)),        # bh
                wspec((H_pad, O_pad), lambda i: (0, 0)),               # wl
                wspec((1, O_pad), lambda i: (0, 0)),                   # bl
            ],
            out_specs=pl.BlockSpec((TB, O_pad), lambda i: (i, 0)),     # lane-dense bf16 store
            compiler_params=pltpu.CompilerParams(
                dimension_semantics=("parallel",),                     # dual-TC batch split
                vmem_limit_bytes=vmem_limit),
        )

    args = (x_p, prepared["w1"], prepared["b1"], prepared["wh"],
            prepared["bh"], prepared["wl"], prepared["bl"])
    try:
        y_pad = jax.block_until_ready(build(True)(*args))
    except Exception:
        # Fallback if this JAX build rejects single-buffered pipeline_mode.
        y_pad = build(False)(*args)

    # Un-pad + passthrough concat of the trailing distribution columns in XLA,
    # keeping all cross-lane / ragged work out of the kernel.
    y = y_pad[:B, :O].astype(jnp.float32)
    return jnp.concatenate([y, x[:, -num_distribution:]], axis=1)


def init_params(key, input_dim, output_dim, num_distribution, hidden_dim, num_layer):
    """Deterministic init mimicking nn.Linear default U(-1/sqrt(fan_in), 1/sqrt(fan_in))."""
    in_dim = input_dim + num_distribution

    def linear(key, fan_in, fan_out):
        kw, kb = jax.random.split(key)
        bound = 1.0 / math.sqrt(fan_in)
        w = jax.random.uniform(kw, (fan_in, fan_out), jnp.float32, -bound, bound)
        b = jax.random.uniform(kb, (1, fan_out), jnp.float32, -bound, bound)
        return w, b

    keys = jax.random.split(key, 2 + max(num_layer, 1))
    w1, b1 = linear(keys[0], in_dim, hidden_dim)
    wh_list, bh_list = [], []
    for i in range(num_layer):
        w, b = linear(keys[1 + i], hidden_dim, hidden_dim)
        wh_list.append(w)
        bh_list.append(b)
    wl, bl = linear(keys[1 + num_layer], hidden_dim, output_dim)
    if num_layer > 0:
        wh = jnp.stack(wh_list, axis=0)            # [num_layer, hidden, hidden]
        bh = jnp.stack(bh_list, axis=0)            # [num_layer, 1, hidden]
    else:
        wh = jnp.zeros((0, hidden_dim, hidden_dim), jnp.float32)
        bh = jnp.zeros((0, 1, hidden_dim), jnp.float32)
    return {"w1": w1, "b1": b1, "wh": wh, "bh": bh, "wl": wl, "bl": bl}


def reference_forward(x, params, *, num_layer, num_distribution,
                      compute_dtype=jnp.bfloat16):
    """Pure-JAX reference at matching precision (bf16 matmul, f32 accum, bf16 out)."""
    cd = compute_dtype
    h = jnp.dot(x.astype(cd), params["w1"].astype(cd),
                preferred_element_type=jnp.float32) + params["b1"]
    h = jnp.maximum(h, 0.0)
    for i in range(num_layer):
        h = jnp.dot(h.astype(cd), params["wh"][i].astype(cd),
                    preferred_element_type=jnp.float32) + params["bh"][i]
        h = jnp.maximum(h, 0.0)
    y = jnp.dot(h.astype(cd), params["wl"].astype(cd),
                preferred_element_type=jnp.float32) + params["bl"]
    y = jnp.maximum(y, 0.0).astype(cd).astype(jnp.float32)   # kernel stores bf16
    return jnp.concatenate([y, x[:, -num_distribution:]], axis=1)


if __name__ == "__main__":
    key = jax.random.PRNGKey(0)

    configs = [
        # (batch, input_dim, num_distribution, hidden_dim, output_dim, num_layer)
        (8,   6, 2, 32, 4, 2),    # tiny: single grid step
        (300, 6, 2, 64, 4, 3),    # multi grid step (>=2 steps -> dual-TC path)
    ]
    for (batch, input_dim, num_distribution, hidden_dim,
         output_dim, num_layer) in configs:
        key, k_params, k_x = jax.random.split(key, 3)
        params = init_params(k_params, input_dim, output_dim,
                             num_distribution, hidden_dim, num_layer)
        prepared = prepare_params(params)     # pad/cast weights ONCE (cacheable)
        # Module input already includes the num_distribution columns.
        x = jax.random.normal(k_x, (batch, input_dim + num_distribution), jnp.float32)

        out = different_weights_normalnet(x, prepared,
                                          num_distribution=num_distribution)
        out = jax.block_until_ready(out)

        ref = reference_forward(x, params, num_layer=num_layer,
                                num_distribution=num_distribution)
        assert out.shape == (batch, output_dim + num_distribution)
        max_err = float(jnp.max(jnp.abs(out - ref)))
        assert jnp.allclose(out, ref, atol=2e-2, rtol=2e-2), max_err

    print("KERNEL_OK")
</pallas_src>

<mosaic_0001>
module attributes {stable_mosaic.version = 11 : i64} {
  func.func @_normalnet_kernel(%arg0: i32, %arg1: memref<8x8xf32, #tpu.memory_space<vmem>>, %arg2: memref<8x128xbf16, #tpu.memory_space<vmem>>, %arg3: memref<1x128xf32, #tpu.memory_space<vmem>>, %arg4: memref<2x128x128xbf16, #tpu.memory_space<vmem>>, %arg5: memref<2x1x128xf32, #tpu.memory_space<vmem>>, %arg6: memref<128x128xbf16, #tpu.memory_space<vmem>>, %arg7: memref<1x128xf32, #tpu.memory_space<vmem>>, %arg8: memref<8x128xbf16, #tpu.memory_space<vmem>>) attributes {dimension_semantics = [#tpu.dimension_semantics<parallel>], iteration_bounds = array<i64: 1>, scalar_prefetch = 0 : i64, scratch_operands = 0 : i64, tpu.core_type = #tpu.core_type<tc>, window_params = [{transform_indices = @transform_0, window_bounds = array<i64: 8, 8>}, {pipeline_mode = #tpu.pipeline_mode<synchronous>, transform_indices = @transform_1, window_bounds = array<i64: 8, 128>}, {pipeline_mode = #tpu.pipeline_mode<synchronous>, transform_indices = @transform_2, window_bounds = array<i64: 1, 128>}, {pipeline_mode = #tpu.pipeline_mode<synchronous>, transform_indices = @transform_3, window_bounds = array<i64: 2, 128, 128>}, {pipeline_mode = #tpu.pipeline_mode<synchronous>, transform_indices = @transform_4, window_bounds = array<i64: 2, 1, 128>}, {pipeline_mode = #tpu.pipeline_mode<synchronous>, transform_indices = @transform_5, window_bounds = array<i64: 128, 128>}, {pipeline_mode = #tpu.pipeline_mode<synchronous>, transform_indices = @transform_6, window_bounds = array<i64: 1, 128>}, {transform_indices = @transform_7, window_bounds = array<i64: 8, 128>}]} {
    %c0 = arith.constant 0 : index
    %c0_0 = arith.constant 0 : index
    %0 = vector.load %arg1[%c0, %c0_0] : memref<8x8xf32, #tpu.memory_space<vmem>>, vector<8x8xf32>
    %1 = arith.truncf %0 : vector<8x8xf32> to vector<8x8xbf16>
    %c0_1 = arith.constant 0 : index
    %c0_2 = arith.constant 0 : index
    %2 = vector.load %arg2[%c0_1, %c0_2] : memref<8x128xbf16, #tpu.memory_space<vmem>>, vector<8x128xbf16>
    %cst = arith.constant dense<0.000000e+00> : vector<8x128xf32>
    %3 = tpu.matmul %1, %2, %cst {dimension_numbers = #tpu.dot_dimension_numbers<[1], [0], [0], [1], [0, 0, 1, 1], [], []>} : vector<8x8xbf16>, vector<8x128xbf16>, vector<8x128xf32> -> vector<8x128xf32>
    %c0_3 = arith.constant 0 : index
    %c0_4 = arith.constant 0 : index
    %4 = vector.load %arg3[%c0_3, %c0_4] : memref<1x128xf32, #tpu.memory_space<vmem>>, vector<1x128xf32>
    %5 = vector.broadcast %4 : vector<1x128xf32> to vector<8x128xf32>
    %6 = arith.addf %3, %5 : vector<8x128xf32>
    %cst_5 = arith.constant 0.000000e+00 : f32
    %7 = vector.broadcast %cst_5 : f32 to vector<8x128xf32>
    %8 = arith.maximumf %6, %7 : vector<8x128xf32>
    %9 = arith.truncf %8 : vector<8x128xf32> to vector<8x128xbf16>
    %c0_i32 = arith.constant 0 : i32
    %10 = arith.index_cast %c0_i32 : i32 to index
    %c0_6 = arith.constant 0 : index
    %c0_7 = arith.constant 0 : index
    %11 = vector.load %arg4[%10, %c0_6, %c0_7] : memref<2x128x128xbf16, #tpu.memory_space<vmem>>, vector<1x128x128xbf16>
    %12 = vector.shape_cast %11 : vector<1x128x128xbf16> to vector<128x128xbf16>
    %cst_8 = arith.constant dense<0.000000e+00> : vector<8x128xf32>
    %13 = tpu.matmul %9, %12, %cst_8 {dimension_numbers = #tpu.dot_dimension_numbers<[1], [0], [0], [1], [0, 0, 1, 1], [], []>} : vector<8x128xbf16>, vector<128x128xbf16>, vector<8x128xf32> -> vector<8x128xf32>
    %14 = arith.index_cast %c0_i32 : i32 to index
    %c0_9 = arith.constant 0 : index
    %c0_10 = arith.constant 0 : index
    %15 = vector.load %arg5[%14, %c0_9, %c0_10] : memref<2x1x128xf32, #tpu.memory_space<vmem>>, vector<1x1x128xf32>
    %16 = vector.shape_cast %15 : vector<1x1x128xf32> to vector<1x128xf32>
    %17 = vector.broadcast %16 : vector<1x128xf32> to vector<8x128xf32>
    %18 = arith.addf %13, %17 : vector<8x128xf32>
    %cst_11 = arith.constant 0.000000e+00 : f32
    %19 = vector.broadcast %cst_11 : f32 to vector<8x128xf32>
    %20 = arith.maximumf %18, %19 : vector<8x128xf32>
    %21 = arith.truncf %20 : vector<8x128xf32> to vector<8x128xbf16>
    %c1_i32 = arith.constant 1 : i32
    %22 = arith.index_cast %c1_i32 : i32 to index
    %c0_12 = arith.constant 0 : index
    %c0_13 = arith.constant 0 : index
    %23 = vector.load %arg4[%22, %c0_12, %c0_13] : memref<2x128x128xbf16, #tpu.memory_space<vmem>>, vector<1x128x128xbf16>
    %24 = vector.shape_cast %23 : vector<1x128x128xbf16> to vector<128x128xbf16>
    %cst_14 = arith.constant dense<0.000000e+00> : vector<8x128xf32>
    %25 = tpu.matmul %21, %24, %cst_14 {dimension_numbers = #tpu.dot_dimension_numbers<[1], [0], [0], [1], [0, 0, 1, 1], [], []>} : vector<8x128xbf16>, vector<128x128xbf16>, vector<8x128xf32> -> vector<8x128xf32>
    %26 = arith.index_cast %c1_i32 : i32 to index
    %c0_15 = arith.constant 0 : index
    %c0_16 = arith.constant 0 : index
    %27 = vector.load %arg5[%26, %c0_15, %c0_16] : memref<2x1x128xf32, #tpu.memory_space<vmem>>, vector<1x1x128xf32>
    %28 = vector.shape_cast %27 : vector<1x1x128xf32> to vector<1x128xf32>
    %29 = vector.broadcast %28 : vector<1x128xf32> to vector<8x128xf32>
    %30 = arith.addf %25, %29 : vector<8x128xf32>
    %cst_17 = arith.constant 0.000000e+00 : f32
    %31 = vector.broadcast %cst_17 : f32 to vector<8x128xf32>
    %32 = arith.maximumf %30, %31 : vector<8x128xf32>
    %33 = arith.truncf %32 : vector<8x128xf32> to vector<8x128xbf16>
    %c2_i32 = arith.constant 2 : i32
    %c0_18 = arith.constant 0 : index
    %c0_19 = arith.constant 0 : index
    %34 = vector.load %arg6[%c0_18, %c0_19] : memref<128x128xbf16, #tpu.memory_space<vmem>>, vector<128x128xbf16>
    %cst_20 = arith.constant dense<0.000000e+00> : vector<8x128xf32>
    %35 = tpu.matmul %33, %34, %cst_20 {dimension_numbers = #tpu.dot_dimension_numbers<[1], [0], [0], [1], [0, 0, 1, 1], [], []>} : vector<8x128xbf16>, vector<128x128xbf16>, vector<8x128xf32> -> vector<8x128xf32>
    %c0_21 = arith.constant 0 : index
    %c0_22 = arith.constant 0 : index
    %36 = vector.load %arg7[%c0_21, %c0_22] : memref<1x128xf32, #tpu.memory_space<vmem>>, vector<1x128xf32>
    %37 = vector.broadcast %36 : vector<1x128xf32> to vector<8x128xf32>
    %38 = arith.addf %35, %37 : vector<8x128xf32>
    %cst_23 = arith.constant 0.000000e+00 : f32
    %39 = vector.broadcast %cst_23 : f32 to vector<8x128xf32>
    %40 = arith.maximumf %38, %39 : vector<8x128xf32>
    %41 = arith.truncf %40 : vector<8x128xf32> to vector<8x128xbf16>
    %c0_24 = arith.constant 0 : index
    %c0_25 = arith.constant 0 : index
    %42 = vector.load %arg8[%c0_24, %c0_25] : memref<8x128xbf16, #tpu.memory_space<vmem>>, vector<8x128xbf16>
    tpu.vector_store %arg8[%c0_24, %c0_25], %41 {strides = array<i32>} : memref<8x128xbf16, #tpu.memory_space<vmem>>, vector<8x128xbf16>,
    return
  }
  func.func @transform_0(%arg0: i32) -> (i32, i32) {
    %c0_i32 = arith.constant 0 : i32
    %c0_i32_0 = arith.constant 0 : i32
    return %arg0, %c0_i32 : i32, i32
  }
  func.func @transform_1(%arg0: i32) -> (i32, i32) {
    %c0_i32 = arith.constant 0 : i32
    %c0_i32_0 = arith.constant 0 : i32
    %c0_i32_1 = arith.constant 0 : i32
    return %c0_i32, %c0_i32_0 : i32, i32
  }
  func.func @transform_2(%arg0: i32) -> (i32, i32) {
    %c0_i32 = arith.constant 0 : i32
    %c0_i32_0 = arith.constant 0 : i32
    %c0_i32_1 = arith.constant 0 : i32
    return %c0_i32, %c0_i32_0 : i32, i32
  }
  func.func @transform_3(%arg0: i32) -> (i32, i32, i32) {
    %c0_i32 = arith.constant 0 : i32
    %c0_i32_0 = arith.constant 0 : i32
    %c0_i32_1 = arith.constant 0 : i32
    %c0_i32_2 = arith.constant 0 : i32
    return %c0_i32, %c0_i32_0, %c0_i32_1 : i32, i32, i32
  }
  func.func @transform_4(%arg0: i32) -> (i32, i32, i32) {
    %c0_i32 = arith.constant 0 : i32
    %c0_i32_0 = arith.constant 0 : i32
    %c0_i32_1 = arith.constant 0 : i32
    %c0_i32_2 = arith.constant 0 : i32
    return %c0_i32, %c0_i32_0, %c0_i32_1 : i32, i32, i32
  }
  func.func @transform_5(%arg0: i32) -> (i32, i32) {
    %c0_i32 = arith.constant 0 : i32
    %c0_i32_0 = arith.constant 0 : i32
    %c0_i32_1 = arith.constant 0 : i32
    return %c0_i32, %c0_i32_0 : i32, i32
  }
  func.func @transform_6(%arg0: i32) -> (i32, i32) {
    %c0_i32 = arith.constant 0 : i32
    %c0_i32_0 = arith.constant 0 : i32
    %c0_i32_1 = arith.constant 0 : i32
    return %c0_i32, %c0_i32_0 : i32, i32
  }
  func.func @transform_7(%arg0: i32) -> (i32, i32) {
    %c0_i32 = arith.constant 0 : i32
    %c0_i32_0 = arith.constant 0 : i32
    return %arg0, %c0_i32 : i32, i32
  }
}

module attributes {stable_mosaic.version = 11 : i64} {
  func.func @_normalnet_kernel(%arg0: i32, %arg1: memref<8x8xf32, #tpu.memory_space<vmem>>, %arg2: memref<8x128xbf16, #tpu.memory_space<vmem>>, %arg3: memref<1x128xf32, #tpu.memory_space<vmem>>, %arg4: memref<2x128x128xbf16, #tpu.memory_space<vmem>>, %arg5: memref<2x1x128xf32, #tpu.memory_space<vmem>>, %arg6: memref<128x128xbf16, #tpu.memory_space<vmem>>, %arg7: memref<1x128xf32, #tpu.memory_space<vmem>>, %arg8: memref<8x128xbf16, #tpu.memory_space<vmem>>) attributes {dimension_semantics = [#tpu.dimension_semantics<parallel>], iteration_bounds = array<i64: 1>, scalar_prefetch = 0 : i64, scratch_operands = 0 : i64, tpu.core_type = #tpu.core_type<tc>, window_params = [{transform_indices = @transform_0, window_bounds = array<i64: 8, 8>}, {pipeline_mode = #tpu.pipeline_mode<synchronous>, transform_indices = @transform_1, window_bounds = array<i64: 8, 128>}, {pipeline_mode = #tpu.pipeline_mode<synchronous>, transform_indices = @transform_2, window_bounds = array<i64: 1, 128>}, {pipeline_mode = #tpu.pipeline_mode<synchronous>, transform_indices = @transform_3, window_bounds = array<i64: 2, 128, 128>}, {pipeline_mode = #tpu.pipeline_mode<synchronous>, transform_indices = @transform_4, window_bounds = array<i64: 2, 1, 128>}, {pipeline_mode = #tpu.pipeline_mode<synchronous>, transform_indices = @transform_5, window_bounds = array<i64: 128, 128>}, {pipeline_mode = #tpu.pipeline_mode<synchronous>, transform_indices = @transform_6, window_bounds = array<i64: 1, 128>}, {transform_indices = @transform_7, window_bounds = array<i64: 8, 128>}]} {
    %c0 = arith.constant 0 : index
    %c0_0 = arith.constant 0 : index
    %0 = vector.load %arg1[%c0, %c0_0] : memref<8x8xf32, #tpu.memory_space<vmem>>, vector<8x8xf32>
    %1 = arith.truncf %0 : vector<8x8xf32> to vector<8x8xbf16>
    %c0_1 = arith.constant 0 : index
    %c0_2 = arith.constant 0 : index
    %2 = vector.load %arg2[%c0_1, %c0_2] : memref<8x128xbf16, #tpu.memory_space<vmem>>, vector<8x128xbf16>
    %cst = arith.constant dense<0.000000e+00> : vector<8x128xf32>
    %3 = tpu.matmul %1, %2, %cst {dimension_numbers = #tpu.dot_dimension_numbers<[1], [0], [0], [1], [0, 0, 1, 1], [], []>} : vector<8x8xbf16>, vector<8x128xbf16>, vector<8x128xf32> -> vector<8x128xf32>
    %c0_3 = arith.constant 0 : index
    %c0_4 = arith.constant 0 : index
    %4 = vector.load %arg3[%c0_3, %c0_4] : memref<1x128xf32, #tpu.memory_space<vmem>>, vector<1x128xf32>
    %5 = vector.broadcast %4 : vector<1x128xf32> to vector<8x128xf32>
    %6 = arith.addf %3, %5 : vector<8x128xf32>
    %cst_5 = arith.constant 0.000000e+00 : f32
    %7 = vector.broadcast %cst_5 : f32 to vector<8x128xf32>
    %8 = arith.maximumf %6, %7 : vector<8x128xf32>
    %9 = arith.truncf %8 : vector<8x128xf32> to vector<8x128xbf16>
    %c0_i32 = arith.constant 0 : i32
    %10 = arith.index_cast %c0_i32 : i32 to index
    %c0_6 = arith.constant 0 : index
    %c0_7 = arith.constant 0 : index
    %11 = vector.load %arg4[%10, %c0_6, %c0_7] : memref<2x128x128xbf16, #tpu.memory_space<vmem>>, vector<1x128x128xbf16>
    %12 = vector.shape_cast %11 : vector<1x128x128xbf16> to vector<128x128xbf16>
    %cst_8 = arith.constant dense<0.000000e+00> : vector<8x128xf32>
    %13 = tpu.matmul %9, %12, %cst_8 {dimension_numbers = #tpu.dot_dimension_numbers<[1], [0], [0], [1], [0, 0, 1, 1], [], []>} : vector<8x128xbf16>, vector<128x128xbf16>, vector<8x128xf32> -> vector<8x128xf32>
    %14 = arith.index_cast %c0_i32 : i32 to index
    %c0_9 = arith.constant 0 : index
    %c0_10 = arith.constant 0 : index
    %15 = vector.load %arg5[%14, %c0_9, %c0_10] : memref<2x1x128xf32, #tpu.memory_space<vmem>>, vector<1x1x128xf32>
    %16 = vector.shape_cast %15 : vector<1x1x128xf32> to vector<1x128xf32>
    %17 = vector.broadcast %16 : vector<1x128xf32> to vector<8x128xf32>
    %18 = arith.addf %13, %17 : vector<8x128xf32>
    %cst_11 = arith.constant 0.000000e+00 : f32
    %19 = vector.broadcast %cst_11 : f32 to vector<8x128xf32>
    %20 = arith.maximumf %18, %19 : vector<8x128xf32>
    %21 = arith.truncf %20 : vector<8x128xf32> to vector<8x128xbf16>
    %c1_i32 = arith.constant 1 : i32
    %22 = arith.index_cast %c1_i32 : i32 to index
    %c0_12 = arith.constant 0 : index
    %c0_13 = arith.constant 0 : index
    %23 = vector.load %arg4[%22, %c0_12, %c0_13] : memref<2x128x128xbf16, #tpu.memory_space<vmem>>, vector<1x128x128xbf16>
    %24 = vector.shape_cast %23 : vector<1x128x128xbf16> to vector<128x128xbf16>
    %cst_14 = arith.constant dense<0.000000e+00> : vector<8x128xf32>
    %25 = tpu.matmul %21, %24, %cst_14 {dimension_numbers = #tpu.dot_dimension_numbers<[1], [0], [0], [1], [0, 0, 1, 1], [], []>} : vector<8x128xbf16>, vector<128x128xbf16>, vector<8x128xf32> -> vector<8x128xf32>
    %26 = arith.index_cast %c1_i32 : i32 to index
    %c0_15 = arith.constant 0 : index
    %c0_16 = arith.constant 0 : index
    %27 = vector.load %arg5[%26, %c0_15, %c0_16] : memref<2x1x128xf32, #tpu.memory_space<vmem>>, vector<1x1x128xf32>
    %28 = vector.shape_cast %27 : vector<1x1x128xf32> to vector<1x128xf32>
    %29 = vector.broadcast %28 : vector<1x128xf32> to vector<8x128xf32>
    %30 = arith.addf %25, %29 : vector<8x128xf32>
    %cst_17 = arith.constant 0.000000e+00 : f32
    %31 = vector.broadcast %cst_17 : f32 to vector<8x128xf32>
    %32 = arith.maximumf %30, %31 : vector<8x128xf32>
    %33 = arith.truncf %32 : vector<8x128xf32> to vector<8x128xbf16>
    %c2_i32 = arith.constant 2 : i32
    %c0_18 = arith.constant 0 : index
    %c0_19 = arith.constant 0 : index
    %34 = vector.load %arg6[%c0_18, %c0_19] : memref<128x128xbf16, #tpu.memory_space<vmem>>, vector<128x128xbf16>
    %cst_20 = arith.constant dense<0.000000e+00> : vector<8x128xf32>
    %35 = tpu.matmul %33, %34, %cst_20 {dimension_numbers = #tpu.dot_dimension_numbers<[1], [0], [0], [1], [0, 0, 1, 1], [], []>} : vector<8x128xbf16>, vector<128x128xbf16>, vector<8x128xf32> -> vector<8x128xf32>
    %c0_21 = arith.constant 0 : index
    %c0_22 = arith.constant 0 : index
    %36 = vector.load %arg7[%c0_21, %c0_22] : memref<1x128xf32, #tpu.memory_space<vmem>>, vector<1x128xf32>
    %37 = vector.broadcast %36 : vector<1x128xf32> to vector<8x128xf32>
    %38 = arith.addf %35, %37 : vector<8x128xf32>
    %cst_23 = arith.constant 0.000000e+00 : f32
    %39 = vector.broadcast %cst_23 : f32 to vector<8x128xf32>
    %40 = arith.maximumf %38, %39 : vector<8x128xf32>
    %41 = arith.truncf %40 : vector<8x128xf32> to vector<8x128xbf16>
    %c0_24 = arith.constant 0 : index
    %c0_25 = arith.constant 0 : index
    %42 = vector.load %arg8[%c0_24, %c0_25] : memref<8x128xbf16, #tpu.memory_space<vmem>>, vector<8x128xbf16>
    tpu.vector_store %arg8[%c0_24, %c0_25], %41 {strides = array<i32>} : memref<8x128xbf16, #tpu.memory_space<vmem>>, vector<8x128xbf16>,
    return
  }
  func.func @transform_0(%arg0: i32) -> (i32, i32) {
    %c0_i32 = arith.constant 0 : i32
    %c0_i32_0 = arith.constant 0 : i32
    return %arg0, %c0_i32 : i32, i32
  }
  func.func @transform_1(%arg0: i32) -> (i32, i32) {
    %c0_i32 = arith.constant 0 : i32
    %c0_i32_0 = arith.constant 0 : i32
    %c0_i32_1 = arith.constant 0 : i32
    return %c0_i32, %c0_i32_0 : i32, i32
  }
  func.func @transform_2(%arg0: i32) -> (i32, i32) {
    %c0_i32 = arith.constant 0 : i32
    %c0_i32_0 = arith.constant 0 : i32
    %c0_i32_1 = arith.constant 0 : i32
    return %c0_i32, %c0_i32_0 : i32, i32
  }
  func.func @transform_3(%arg0: i32) -> (i32, i32, i32) {
    %c0_i32 = arith.constant 0 : i32
    %c0_i32_0 = arith.constant 0 : i32
    %c0_i32_1 = arith.constant 0 : i32
    %c0_i32_2 = arith.constant 0 : i32
    return %c0_i32, %c0_i32_0, %c0_i32_1 : i32, i32, i32
  }
  func.func @transform_4(%arg0: i32) -> (i32, i32, i32) {
    %c0_i32 = arith.constant 0 : i32
    %c0_i32_0 = arith.constant 0 : i32
    %c0_i32_1 = arith.constant 0 : i32
    %c0_i32_2 = arith.constant 0 : i32
    return %c0_i32, %c0_i32_0, %c0_i32_1 : i32, i32, i32
  }
  func.func @transform_5(%arg0: i32) -> (i32, i32) {
    %c0_i32 = arith.constant 0 : i32
    %c0_i32_0 = arith.constant 0 : i32
    %c0_i32_1 = arith.constant 0 : i32
    return %c0_i32, %c0_i32_0 : i32, i32
  }
  func.func @transform_6(%arg0: i32) -> (i32, i32) {
    %c0_i32 = arith.constant 0 : i32
    %c0_i32_0 = arith.constant 0 : i32
    %c0_i32_1 = arith.constant 0 : i32
    return %c0_i32, %c0_i32_0 : i32, i32
  }
  func.func @transform_7(%arg0: i32) -> (i32, i32) {
    %c0_i32 = arith.constant 0 : i32
    %c0_i32_0 = arith.constant 0 : i32
    return %arg0, %c0_i32 : i32, i32
  }
}

</mosaic_0001>

<bundles_post_ra>
// kernel: tpu_custom_call.1
= control target key start
LH: loop header
LB: loop body
LE: loop exit
PB: predicated region body
PF: predicated region fallthrough
CT: control target
= control target key end

     0   :  { %12 = vsyncpa [#allocation3], 0  ;;  %s873_s0 = inlined_call_operand.hbm [shape: f32[8,8], index: 0, kind: input, shape index: {}]   ;;  %s874_s1 = inlined_call_operand.hbm [shape: bf16[8,128], index: 1, kind: input, shape index: {}]   ;;  %s875_s2 = inlined_call_operand.vmem [shape: f32[1,128], index: 2, kind: input, shape index: {}]   ;;  %s876_s3 = inlined_call_operand.hbm [shape: bf16[2,128,128], index: 3, kind: input, shape index: {}]   ;;  %s877_s4 = inlined_call_operand.vmem [shape: f32[2,1,128], index: 4, kind: input, shape index: {}]   ;;  %s878_s5 = inlined_call_operand.hbm [shape: bf16[128,128], index: 5, kind: input, shape index: {}]   ;;  %s879_s6 = inlined_call_operand.vmem [shape: f32[1,128], index: 6, kind: input, shape index: {}]   ;;  %s880_s7 = inlined_call_operand.hbm [shape: bf16[8,128], index: 7, kind: output, shape index: {}]  }
   0x1   :  { %13 = vsyncpa [#allocation6], 0 }
   0x2   :  { %14 = vsyncpa [#allocation9], 0 }
   0x3   :  { %15 = vsyncpa [#allocation4], 0  ;;  %s764_s24 = smov [#allocation5]   ;;  %s765_s26 = smov [#allocation2]  }
   0x4   :  { %s32_s25 = sshll.u32 %s764_s24, 4  ;;  %s22_s27 = sshll.u32 %s765_s26, 4  ;;  %s33_s25 = int_to_ptr.vmem [resolvable:$true] %s32_s25  ;;  %s23_s27 = int_to_ptr.vmem [resolvable:$true] %s22_s27 }
   0x5   :  { %s664_s28 = scalar_lea.vmem %s33_s25, 64  ;;  %p669_p1 = scmp.lt.s32.totalorder %s33_s25, %s33_s25 }
   0x6   :  { %p665_p0 = scmp.ne.s32.totalorder %s33_s25, %s664_s28  ;;  %p670_p2 = scmp.lt.s32.totalorder %s664_s28, %s664_s28 }
   0x8   :  { %p671_p3 = por %p670_p2, %p669_p1 }
   0xa   :  { %p672_p4 = pnand %p671_p3, %p665_p0 }
   0xc   :  { %675 = shalt.err (!%p672_p4)
}
   0xd   :  { %35 = dma.hbm_to_vmem [thread:$0]  %s874_s1, 64, %s33_s25, [#allocation6]  }
   0xe   :  { %s684_s8 = scalar_lea.vmem %s23_s27, 128  ;;  %p689_p6 = scmp.lt.s32.totalorder %s23_s27, %s23_s27 }
   0xf   :  { %p685_p5 = scmp.ne.s32.totalorder %s23_s27, %s684_s8  ;;  %p690_p7 = scmp.lt.s32.totalorder %s684_s8, %s684_s8 }
  0x11   :  { %p691_p8 = por %p690_p7, %p689_p6 }
  0x13   :  { %p692_p9 = pnand %p691_p8, %p685_p5 }
  0x15   :  { %695 = shalt.err (!%p692_p9)
}
  0x16   :  { %25 = dma.hbm_to_vmem [thread:$0]  %s873_s0, 128, %s23_s27, [#allocation3]  }
  0x17   :  { %s766_s11 = smov [#allocation7]  }
  0x18   :  { %s43_s12 = sshll.u32 %s766_s11, 4  ;;  %s44_s12 = int_to_ptr.vmem [resolvable:$true] %s43_s12 }
  0x19   :  { %s704_s13 = scalar_lea.vmem %s44_s12, 2048  ;;  %p709_p11 = scmp.lt.s32.totalorder %s44_s12, %s44_s12 }
  0x1a   :  { %p705_p10 = scmp.ne.s32.totalorder %s44_s12, %s704_s13  ;;  %p710_p12 = scmp.lt.s32.totalorder %s704_s13, %s704_s13 }
  0x1c   :  { %p711_p13 = por %p710_p12, %p709_p11 }
  0x1e   :  { %p712_p0 = pnand %p711_p13, %p705_p10 }
  0x20   :  { %715 = shalt.err (!%p712_p0)
}
  0x21   :  { %s767_s1 = smov 64   ;;  %s768_s14 = smov 4  }
  0x22   :  { %49 = dma.hbm_to_vmem [thread:$0]  %s876_s3, 2048, %s44_s12, [#allocation6], %s767_s1, %s767_s1, %s768_s14  }
  0x23   :  { %s769_s17 = smov [#allocation8]  }
  0x24   :  { %s57_s18 = sshll.u32 %s769_s17, 4  ;;  %s58_s18 = int_to_ptr.vmem [resolvable:$true] %s57_s18 }
  0x25   :  { %s724_s0 = scalar_lea.vmem %s58_s18, 1024  ;;  %p729_p2 = scmp.lt.s32.totalorder %s58_s18, %s58_s18 }
  0x26   :  { %p725_p1 = scmp.ne.s32.totalorder %s58_s18, %s724_s0  ;;  %p730_p3 = scmp.lt.s32.totalorder %s724_s0, %s724_s0 }
  0x28   :  { %p731_p4 = por %p730_p3, %p729_p2 }
  0x2a   :  { %p732_p5 = pnand %p731_p4, %p725_p1 }
  0x2c   :  { %735 = shalt.err (!%p732_p5)
}
  0x2d   :  { %63 = dma.hbm_to_vmem [thread:$0]  %s878_s5, 1024, %s58_s18, [#allocation9], %s767_s1, %s767_s1, %s768_s14  }
  0x2e   :  { %756 = dma.done.wait [#allocation3], 128  }
  0x2f   :  { %757 = vsyncadd [#allocation3], 4294967168 }
  0x30   :  { %758 = dma.done.wait [#allocation6], 2112  }
  0x31   :  { %759 = vsyncadd [#allocation6], 4294965184 }
  0x32   :  { %760 = dma.done.wait [#allocation9], 1024  }
  0x33   :  { %761 = vsyncadd [#allocation9], 4294966272  ;;  %v770_v0 = vmov 0.0   ;;  %vm771_vm0 = vmmov 0   ;;  %vm93_vm1 = vcmask 1043456   ;;  %v79_v2 = vld [vmem:[#allocation2] sm:$0xff] }
  0x34   :  { %557 = vmatprep.subr.bf16.mxu0 %v770_v0  ;;  %559 = vmatprep.mubr.msk.bf16.mxu0 %vm771_vm0, %v770_v0  ;;  %v81_v1 = vld [vmem:[#allocation5] sm:$0xf]  ;;  %v80_v4 = vpack.c.bf16 %v79_v2, %v79_v2  ;;  %vm89_vm2 = vcmask 64512   ;;  %v633_v6 = vld [vmem:[#allocation7 + $0x30] sm:$0xff]   ;;  %v634_v7 = vld [vmem:[#allocation7 + $0x28] sm:$0xff]   ;;  %s772_s26 = smov [#allocation10]  }
  0x35   :  { %563 = vmatprep.subr.bf16.mxu1 %v770_v0  ;;  %579 = vmatprep.mubr.msk.bf16.mxu1 %vm771_vm0, %v770_v0  ;;  %v95_v3 = vsel %vm93_vm1, %v81_v1, 0  ;;  %v632_v5 = vld [vmem:[#allocation7 + $0x38] sm:$0xff]   ;;  %v635_v8 = vld [vmem:[#allocation7 + $0x20] sm:$0xff]   ;;  %v637_v10 = vld [vmem:[#allocation7 + $0x10] sm:$0xff]   ;;  %s487_s27 = sshll.u32 %s772_s26, 4  ;;  %s488_s27 = int_to_ptr.vmem [resolvable:$true] %s487_s27 }
  0x36   :  { %558 = vmatpush3.bf16.msra.mxu0 %v95_v3  ;;  %564 = vmatpush3.bf16.msra.mxu1 %v632_v5  ;;  %v636_v9 = vld [vmem:[#allocation7 + $0x18] sm:$0xff]   ;;  %v638_v11 = vld [vmem:[#allocation7 + $0x8] sm:$0xff]   ;;  %v639_v12 = vld [vmem:[#allocation7] sm:$0xff]   ;;  %p741_p7 = scmp.lt.s32.totalorder %s488_s27, %s488_s27 }
  0x37   :  { %583 = vmatprep.subr.bf16.mxu0 %v770_v0  ;;  %565 = vmatprep.subr.bf16.mxu1 %v770_v0  ;;  %v640_v13 = vld [vmem:[#allocation7 + $0x78] sm:$0xff]   ;;  %v641_v14 = vld [vmem:[#allocation7 + $0x70] sm:$0xff]   ;;  %v642_v15 = vld [vmem:[#allocation7 + $0x68] sm:$0xff]  }
  0x38   :  { %v643_v16 = vld [vmem:[#allocation7 + $0x60] sm:$0xff]   ;;  %v644_v17 = vld [vmem:[#allocation7 + $0x58] sm:$0xff]   ;;  %v645_v18 = vld [vmem:[#allocation7 + $0x50] sm:$0xff]  }
  0x39   :  { %560 = vmatmul.mubr.msk.bf16.vlgmr.msra.gmra.mxu0 %vm89_vm2, %v80_v4  ;;  %v498_v19 = vld [vmem:[%s875_s2] ss:$0 sm:$0xff]  ;;  %v646_v27 = vld [vmem:[#allocation7 + $0x48] sm:$0xff]   ;;  %v647_v28 = vld [vmem:[#allocation7 + $0x40] sm:$0xff]  }
  0x3a   :  { %599 = vmatprep.mubr.msk.bf16.mxu0 %vm771_vm0, %v770_v0  ;;  %566 = vmatpush3.bf16.msra.mxu1 %v633_v6  ;;  %v648_v29 = vld [vmem:[#allocation8 + $0x38] sm:$0xff]   ;;  %v649_v30 = vld [vmem:[#allocation8 + $0x30] sm:$0xff]   ;;  %v650_v31 = vld [vmem:[#allocation8 + $0x28] sm:$0xff]  }
  0x3b   :  { %567 = vmatprep.subr.bf16.mxu1 %v770_v0  ;;  %584 = vmatpush3.bf16.msra.mxu0 %v640_v13  ;;  %v651_v32 = vld [vmem:[#allocation8 + $0x20] sm:$0xff]   ;;  %v652_v33 = vld [vmem:[#allocation8 + $0x18] sm:$0xff]   ;;  %v653_v34 = vld [vmem:[#allocation8 + $0x10] sm:$0xff]  }
  0x3c   :  { %585 = vmatprep.subr.bf16.mxu0 %v770_v0  ;;  %v500_v35 = vld [vmem:[%s877_s4] ss:$0 sm:$0xff]  ;;  %v654_v43 = vld [vmem:[#allocation8 + $0x8] sm:$0xff]   ;;  %v655_v44 = vld [vmem:[#allocation8] sm:$0xff]  }
  0x3d   :  { %v510_v45 = vld [vmem:[%s877_s4 + $0x1] ss:$0 sm:$0xff]  ;;  %v519_v53 = vld [vmem:[%s879_s6] ss:$0 sm:$0xff]  ;;  %s736_s4 = scalar_lea.vmem %s488_s27, 64 }
  0x3e   :  { %568 = vmatpush3.bf16.msra.mxu1 %v634_v7  ;;  %p737_p6 = scmp.ne.s32.totalorder %s488_s27, %s736_s4  ;;  %p742_p8 = scmp.lt.s32.totalorder %s736_s4, %s736_s4 }
  0x3f   :  { %569 = vmatprep.subr.bf16.mxu1 %v770_v0  ;;  %586 = vmatpush3.bf16.msra.mxu0 %v641_v14 }
  0x40   :  { %587 = vmatprep.subr.bf16.mxu0 %v770_v0  ;;  %p743_p9 = por %p742_p8, %p741_p7 }
  0x42   :  { %570 = vmatpush3.bf16.msra.mxu1 %v635_v8  ;;  %p744_p10 = pnand %p743_p9, %p737_p6 }
  0x43   :  { %571 = vmatprep.subr.bf16.mxu1 %v770_v0  ;;  %588 = vmatpush3.bf16.msra.mxu0 %v642_v15 }
  0x44   :  { %589 = vmatprep.subr.bf16.mxu0 %v770_v0 }
  0x46   :  { %572 = vmatpush3.bf16.msra.mxu1 %v636_v9 }
  0x47   :  { %573 = vmatprep.subr.bf16.mxu1 %v770_v0  ;;  %590 = vmatpush3.bf16.msra.mxu0 %v643_v16 }
  0x48   :  { %591 = vmatprep.subr.bf16.mxu0 %v770_v0 }
  0x4a   :  { %574 = vmatpush3.bf16.msra.mxu1 %v637_v10 }
  0x4b   :  { %575 = vmatprep.subr.bf16.mxu1 %v770_v0  ;;  %592 = vmatpush3.bf16.msra.mxu0 %v644_v17 }
  0x4c   :  { %593 = vmatprep.subr.bf16.mxu0 %v770_v0 }
  0x4e   :  { %576 = vmatpush3.bf16.msra.mxu1 %v638_v11 }
  0x4f   :  { %577 = vmatprep.subr.bf16.mxu1 %v770_v0  ;;  %594 = vmatpush3.bf16.msra.mxu0 %v645_v18 }
  0x50   :  { %595 = vmatprep.subr.bf16.mxu0 %v770_v0 }
  0x52   :  { %578 = vmatpush3.bf16.msra.mxu1 %v639_v12 }
  0x53   :  { %603 = vmatprep.subr.bf16.mxu1 %v770_v0  ;;  %596 = vmatpush3.bf16.msra.mxu0 %v646_v27 }
  0x54   :  { %597 = vmatprep.subr.bf16.mxu0 %v770_v0 }
  0x57   :  { %598 = vmatpush3.bf16.msra.mxu0 %v647_v28 }
  0xf9   :  { %v131_v20 = vpop.f32.mrf.mxu0 }
  0xfa   :  { %v132_v21 = vadd.f32 %v498_v19, %v131_v20 }
  0xfb   :  { %v561_v22 = vpop.f32.mrf.mxu0 }
  0xfc   :  { %v137_v23 = vmax.f32 %v132_v21, 0.0 }
  0xfd   :  { %v134_v24 = vpop.f32.mrf.mxu0 }
  0xfe   :  { %v138_v25 = vpack.c.bf16 %v137_v23, %v137_v23 }
  0xff   :  { %v562_v26 = vpop.f32.mrf.mxu0 }
 0x100   :  { %580 = vmatmul.mubr.bf16.vlgmr.msra.gmra.mxu1 %v138_v25 }
 0x101   :  { %619 = vmatprep.mubr.msk.bf16.mxu1 %vm771_vm0, %v770_v0  ;;  %604 = vmatpush3.bf16.msra.mxu1 %v648_v29 }
 0x102   :  { %605 = vmatprep.subr.bf16.mxu1 %v770_v0 }
 0x105   :  { %606 = vmatpush3.bf16.msra.mxu1 %v649_v30 }
 0x106   :  { %607 = vmatprep.subr.bf16.mxu1 %v770_v0 }
 0x109   :  { %608 = vmatpush3.bf16.msra.mxu1 %v650_v31 }
 0x10a   :  { %609 = vmatprep.subr.bf16.mxu1 %v770_v0 }
 0x10d   :  { %610 = vmatpush3.bf16.msra.mxu1 %v651_v32 }
 0x10e   :  { %611 = vmatprep.subr.bf16.mxu1 %v770_v0 }
 0x111   :  { %612 = vmatpush3.bf16.msra.mxu1 %v652_v33 }
 0x112   :  { %613 = vmatprep.subr.bf16.mxu1 %v770_v0 }
 0x115   :  { %614 = vmatpush3.bf16.msra.mxu1 %v653_v34 }
 0x116   :  { %615 = vmatprep.subr.bf16.mxu1 %v770_v0 }
 0x119   :  { %616 = vmatpush3.bf16.msra.mxu1 %v654_v43 }
 0x11a   :  { %617 = vmatprep.subr.bf16.mxu1 %v770_v0 }
 0x11d   :  { %618 = vmatpush3.bf16.msra.mxu1 %v655_v44 }
 0x1c0   :  { %v244_v36 = vpop.f32.mrf.mxu1 }
 0x1c1   :  { %v245_v37 = vadd.f32 %v500_v35, %v244_v36 }
 0x1c2   :  { %v581_v38 = vpop.f32.mrf.mxu1 }
 0x1c3   :  { %v250_v39 = vmax.f32 %v245_v37, 0.0 }
 0x1c4   :  { %v247_v40 = vpop.f32.mrf.mxu1 }
 0x1c5   :  { %v251_v41 = vpack.c.bf16 %v250_v39, %v250_v39 }
 0x1c6   :  { %v582_v42 = vpop.f32.mrf.mxu1 }
 0x1c7   :  { %600 = vmatmul.mubr.bf16.vlgmr.msra.gmra.mxu0 %v251_v41 }
 0x287   :  { %v359_v46 = vpop.f32.mrf.mxu0 }
 0x288   :  { %v360_v47 = vadd.f32 %v510_v45, %v359_v46 }
 0x289   :  { %v601_v48 = vpop.f32.mrf.mxu0 }
 0x28a   :  { %v365_v49 = vmax.f32 %v360_v47, 0.0 }
 0x28b   :  { %v362_v50 = vpop.f32.mrf.mxu0 }
 0x28c   :  { %v366_v51 = vpack.c.bf16 %v365_v49, %v365_v49 }
 0x28d   :  { %v602_v52 = vpop.f32.mrf.mxu0 }
 0x28e   :  { %620 = vmatmul.mubr.bf16.vlgmr.msra.gmra.mxu1 %v366_v51 }
 0x34e   :  { %v472_v54 = vpop.f32.mrf.mxu1 }
 0x34f   :  { %v473_v55 = vadd.f32 %v519_v53, %v472_v54 }
 0x350   :  { %v621_v56 = vpop.f32.mrf.mxu1 }
 0x351   :  { %v478_v57 = vmax.f32 %v473_v55, 0.0 }
 0x352   :  { %v475_v58 = vpop.f32.mrf.mxu1 }
 0x353   :  { %v479_v59 = vpack.c.bf16 %v478_v57, %v478_v57 }
 0x354   :  { %v622_v60 = vpop.f32.mrf.mxu1 }
 0x355   :  { %480 = vst [vmem:[#allocation10] sm:$0xf] %v479_v59 }
 0x356   :  { %747 = shalt.err (!%p744_p10)
}
 0x357   :  { %490 = dma.vmem_to_hbm [thread:$0]  %s488_s27, 64, %s880_s7, [#allocation4]  }
 0x358   :  { %762 = dma.done.wait [#allocation4], 64  }
 0x359   :  { %763 = vsyncadd [#allocation4], 4294967232 }
 0x35a   :  { %494 = vsyncpa [#allocation3], 1 }
 0x35b   :  { %495 = vsyncpa [#allocation6], 1 }
 0x35c   :  { %496 = vsyncpa [#allocation9], 1 }
 0x35d   :  { %497 = vsyncpa [#allocation4], 1 }

// kernel: tpu_custom_call.1
= control target key start
LH: loop header
LB: loop body
LE: loop exit
PB: predicated region body
PF: predicated region fallthrough
CT: control target
= control target key end

     0   :  { %12 = vsyncpa [#allocation3], 0  ;;  %s873_s0 = inlined_call_operand.hbm [shape: f32[8,8], index: 0, kind: input, shape index: {}]   ;;  %s874_s1 = inlined_call_operand.hbm [shape: bf16[8,128], index: 1, kind: input, shape index: {}]   ;;  %s875_s2 = inlined_call_operand.vmem [shape: f32[1,128], index: 2, kind: input, shape index: {}]   ;;  %s876_s3 = inlined_call_operand.hbm [shape: bf16[2,128,128], index: 3, kind: input, shape index: {}]   ;;  %s877_s4 = inlined_call_operand.vmem [shape: f32[2,1,128], index: 4, kind: input, shape index: {}]   ;;  %s878_s5 = inlined_call_operand.hbm [shape: bf16[128,128], index: 5, kind: input, shape index: {}]   ;;  %s879_s6 = inlined_call_operand.vmem [shape: f32[1,128], index: 6, kind: input, shape index: {}]   ;;  %s880_s7 = inlined_call_operand.hbm [shape: bf16[8,128], index: 7, kind: output, shape index: {}]  }
   0x1   :  { %13 = vsyncpa [#allocation6], 0 }
   0x2   :  { %14 = vsyncpa [#allocation9], 0 }
   0x3   :  { %15 = vsyncpa [#allocation4], 0  ;;  %s764_s24 = smov [#allocation5]   ;;  %s765_s26 = smov [#allocation2]  }
   0x4   :  { %s32_s25 = sshll.u32 %s764_s24, 4  ;;  %s22_s27 = sshll.u32 %s765_s26, 4  ;;  %s33_s25 = int_to_ptr.vmem [resolvable:$true] %s32_s25  ;;  %s23_s27 = int_to_ptr.vmem [resolvable:$true] %s22_s27 }
   0x5   :  { %s664_s28 = scalar_lea.vmem %s33_s25, 64  ;;  %p669_p1 = scmp.lt.s32.totalorder %s33_s25, %s33_s25 }
   0x6   :  { %p665_p0 = scmp.ne.s32.totalorder %s33_s25, %s664_s28  ;;  %p670_p2 = scmp.lt.s32.totalorder %s664_s28, %s664_s28 }
   0x8   :  { %p671_p3 = por %p670_p2, %p669_p1 }
   0xa   :  { %p672_p4 = pnand %p671_p3, %p665_p0 }
   0xc   :  { %675 = shalt.err (!%p672_p4)
}
   0xd   :  { %35 = dma.hbm_to_vmem [thread:$0]  %s874_s1, 64, %s33_s25, [#allocation6]  }
   0xe   :  { %s684_s8 = scalar_lea.vmem %s23_s27, 128  ;;  %p689_p6 = scmp.lt.s32.totalorder %s23_s27, %s23_s27 }
   0xf   :  { %p685_p5 = scmp.ne.s32.totalorder %s23_s27, %s684_s8  ;;  %p690_p7 = scmp.lt.s32.totalorder %s684_s8, %s684_s8 }
  0x11   :  { %p691_p8 = por %p690_p7, %p689_p6 }
  0x13   :  { %p692_p9 = pnand %p691_p8, %p685_p5 }
  0x15   :  { %695 = shalt.err (!%p692_p9)
}
  0x16   :  { %25 = dma.hbm_to_vmem [thread:$0]  %s873_s0, 128, %s23_s27, [#allocation3]  }
  0x17   :  { %s766_s11 = smov [#allocation7]  }
  0x18   :  { %s43_s12 = sshll.u32 %s766_s11, 4  ;;  %s44_s12 = int_to_ptr.vmem [resolvable:$true] %s43_s12 }
  0x19   :  { %s704_s13 = scalar_lea.vmem %s44_s12, 2048  ;;  %p709_p11 = scmp.lt.s32.totalorder %s44_s12, %s44_s12 }
  0x1a   :  { %p705_p10 = scmp.ne.s32.totalorder %s44_s12, %s704_s13  ;;  %p710_p12 = scmp.lt.s32.totalorder %s704_s13, %s704_s13 }
  0x1c   :  { %p711_p13 = por %p710_p12, %p709_p11 }
  0x1e   :  { %p712_p0 = pnand %p711_p13, %p705_p10 }
  0x20   :  { %715 = shalt.err (!%p712_p0)
}
  0x21   :  { %s767_s1 = smov 64   ;;  %s768_s14 = smov 4  }
  0x22   :  { %49 = dma.hbm_to_vmem [thread:$0]  %s876_s3, 2048, %s44_s12, [#allocation6], %s767_s1, %s767_s1, %s768_s14  }
  0x23   :  { %s769_s17 = smov [#allocation8]  }
  0x24   :  { %s57_s18 = sshll.u32 %s769_s17, 4  ;;  %s58_s18 = int_to_ptr.vmem [resolvable:$true] %s57_s18 }
  0x25   :  { %s724_s0 = scalar_lea.vmem %s58_s18, 1024  ;;  %p729_p2 = scmp.lt.s32.totalorder %s58_s18, %s58_s18 }
  0x26   :  { %p725_p1 = scmp.ne.s32.totalorder %s58_s18, %s724_s0  ;;  %p730_p3 = scmp.lt.s32.totalorder %s724_s0, %s724_s0 }
  0x28   :  { %p731_p4 = por %p730_p3, %p729_p2 }
  0x2a   :  { %p732_p5 = pnand %p731_p4, %p725_p1 }
  0x2c   :  { %735 = shalt.err (!%p732_p5)
}
  0x2d   :  { %63 = dma.hbm_to_vmem [thread:$0]  %s878_s5, 1024, %s58_s18, [#allocation9], %s767_s1, %s767_s1, %s768_s14  }
  0x2e   :  { %756 = dma.done.wait [#allocation3], 128  }
  0x2f   :  { %757 = vsyncadd [#allocation3], 4294967168 }
  0x30   :  { %758 = dma.done.wait [#allocation6], 2112  }
  0x31   :  { %759 = vsyncadd [#allocation6], 4294965184 }
  0x32   :  { %760 = dma.done.wait [#allocation9], 1024  }
  0x33   :  { %761 = vsyncadd [#allocation9], 4294966272  ;;  %v770_v0 = vmov 0.0   ;;  %vm771_vm0 = vmmov 0   ;;  %vm93_vm1 = vcmask 1043456   ;;  %v79_v2 = vld [vmem:[#allocation2] sm:$0xff] }
  0x34   :  { %557 = vmatprep.subr.bf16.mxu0 %v770_v0  ;;  %559 = vmatprep.mubr.msk.bf16.mxu0 %vm771_vm0, %v770_v0  ;;  %v81_v1 = vld [vmem:[#allocation5] sm:$0xf]  ;;  %v80_v4 = vpack.c.bf16 %v79_v2, %v79_v2  ;;  %vm89_vm2 = vcmask 64512   ;;  %v633_v6 = vld [vmem:[#allocation7 + $0x30] sm:$0xff]   ;;  %v634_v7 = vld [vmem:[#allocation7 + $0x28] sm:$0xff]   ;;  %s772_s26 = smov [#allocation10]  }
  0x35   :  { %563 = vmatprep.subr.bf16.mxu1 %v770_v0  ;;  %579 = vmatprep.mubr.msk.bf16.mxu1 %vm771_vm0, %v770_v0  ;;  %v95_v3 = vsel %vm93_vm1, %v81_v1, 0  ;;  %v632_v5 = vld [vmem:[#allocation7 + $0x38] sm:$0xff]   ;;  %v635_v8 = vld [vmem:[#allocation7 + $0x20] sm:$0xff]   ;;  %v637_v10 = vld [vmem:[#allocation7 + $0x10] sm:$0xff]   ;;  %s487_s27 = sshll.u32 %s772_s26, 4  ;;  %s488_s27 = int_to_ptr.vmem [resolvable:$true] %s487_s27 }
  0x36   :  { %558 = vmatpush3.bf16.msra.mxu0 %v95_v3  ;;  %564 = vmatpush3.bf16.msra.mxu1 %v632_v5  ;;  %v636_v9 = vld [vmem:[#allocation7 + $0x18] sm:$0xff]   ;;  %v638_v11 = vld [vmem:[#allocation7 + $0x8] sm:$0xff]   ;;  %v639_v12 = vld [vmem:[#allocation7] sm:$0xff]   ;;  %p741_p7 = scmp.lt.s32.totalorder %s488_s27, %s488_s27 }
  0x37   :  { %583 = vmatprep.subr.bf16.mxu0 %v770_v0  ;;  %565 = vmatprep.subr.bf16.mxu1 %v770_v0  ;;  %v640_v13 = vld [vmem:[#allocation7 + $0x78] sm:$0xff]   ;;  %v641_v14 = vld [vmem:[#allocation7 + $0x70] sm:$0xff]   ;;  %v642_v15 = vld [vmem:[#allocation7 + $0x68] sm:$0xff]  }
  0x38   :  { %v643_v16 = vld [vmem:[#allocation7 + $0x60] sm:$0xff]   ;;  %v644_v17 = vld [vmem:[#allocation7 + $0x58] sm:$0xff]   ;;  %v645_v18 = vld [vmem:[#allocation7 + $0x50] sm:$0xff]  }
  0x39   :  { %560 = vmatmul.mubr.msk.bf16.vlgmr.msra.gmra.mxu0 %vm89_vm2, %v80_v4  ;;  %v498_v19 = vld [vmem:[%s875_s2] ss:$0 sm:$0xff]  ;;  %v646_v27 = vld [vmem:[#allocation7 + $0x48] sm:$0xff]   ;;  %v647_v28 = vld [vmem:[#allocation7 + $0x40] sm:$0xff]  }
  0x3a   :  { %599 = vmatprep.mubr.msk.bf16.mxu0 %vm771_vm0, %v770_v0  ;;  %566 = vmatpush3.bf16.msra.mxu1 %v633_v6  ;;  %v648_v29 = vld [vmem:[#allocation8 + $0x38] sm:$0xff]   ;;  %v649_v30 = vld [vmem:[#allocation8 + $0x30] sm:$0xff]   ;;  %v650_v31 = vld [vmem:[#allocation8 + $0x28] sm:$0xff]  }
  0x3b   :  { %567 = vmatprep.subr.bf16.mxu1 %v770_v0  ;;  %584 = vmatpush3.bf16.msra.mxu0 %v640_v13  ;;  %v651_v32 = vld [vmem:[#allocation8 + $0x20] sm:$0xff]   ;;  %v652_v33 = vld [vmem:[#allocation8 + $0x18] sm:$0xff]   ;;  %v653_v34 = vld [vmem:[#allocation8 + $0x10] sm:$0xff]  }
  0x3c   :  { %585 = vmatprep.subr.bf16.mxu0 %v770_v0  ;;  %v500_v35 = vld [vmem:[%s877_s4] ss:$0 sm:$0xff]  ;;  %v654_v43 = vld [vmem:[#allocation8 + $0x8] sm:$0xff]   ;;  %v655_v44 = vld [vmem:[#allocation8] sm:$0xff]  }
  0x3d   :  { %v510_v45 = vld [vmem:[%s877_s4 + $0x1] ss:$0 sm:$0xff]  ;;  %v519_v53 = vld [vmem:[%s879_s6] ss:$0 sm:$0xff]  ;;  %s736_s4 = scalar_lea.vmem %s488_s27, 64 }
  0x3e   :  { %568 = vmatpush3.bf16.msra.mxu1 %v634_v7  ;;  %p737_p6 = scmp.ne.s32.totalorder %s488_s27, %s736_s4  ;;  %p742_p8 = scmp.lt.s32.totalorder %s736_s4, %s736_s4 }
  0x3f   :  { %569 = vmatprep.subr.bf16.mxu1 %v770_v0  ;;  %586 = vmatpush3.bf16.msra.mxu0 %v641_v14 }
  0x40   :  { %587 = vmatprep.subr.bf16.mxu0 %v770_v0  ;;  %p743_p9 = por %p742_p8, %p741_p7 }
  0x42   :  { %570 = vmatpush3.bf16.msra.mxu1 %v635_v8  ;;  %p744_p10 = pnand %p743_p9, %p737_p6 }
  0x43   :  { %571 = vmatprep.subr.bf16.mxu1 %v770_v0  ;;  %588 = vmatpush3.bf16.msra.mxu0 %v642_v15 }
  0x44   :  { %589 = vmatprep.subr.bf16.mxu0 %v770_v0 }
  0x46   :  { %572 = vmatpush3.bf16.msra.mxu1 %v636_v9 }
  0x47   :  { %573 = vmatprep.subr.bf16.mxu1 %v770_v0  ;;  %590 = vmatpush3.bf16.msra.mxu0 %v643_v16 }
  0x48   :  { %591 = vmatprep.subr.bf16.mxu0 %v770_v0 }
  0x4a   :  { %574 = vmatpush3.bf16.msra.mxu1 %v637_v10 }
  0x4b   :  { %575 = vmatprep.subr.bf16.mxu1 %v770_v0  ;;  %592 = vmatpush3.bf16.msra.mxu0 %v644_v17 }
  0x4c   :  { %593 = vmatprep.subr.bf16.mxu0 %v770_v0 }
  0x4e   :  { %576 = vmatpush3.bf16.msra.mxu1 %v638_v11 }
  0x4f   :  { %577 = vmatprep.subr.bf16.mxu1 %v770_v0  ;;  %594 = vmatpush3.bf16.msra.mxu0 %v645_v18 }
  0x50   :  { %595 = vmatprep.subr.bf16.mxu0 %v770_v0 }
  0x52   :  { %578 = vmatpush3.bf16.msra.mxu1 %v639_v12 }
  0x53   :  { %603 = vmatprep.subr.bf16.mxu1 %v770_v0  ;;  %596 = vmatpush3.bf16.msra.mxu0 %v646_v27 }
  0x54   :  { %597 = vmatprep.subr.bf16.mxu0 %v770_v0 }
  0x57   :  { %598 = vmatpush3.bf16.msra.mxu0 %v647_v28 }
  0xf9   :  { %v131_v20 = vpop.f32.mrf.mxu0 }
  0xfa   :  { %v132_v21 = vadd.f32 %v498_v19, %v131_v20 }
  0xfb   :  { %v561_v22 = vpop.f32.mrf.mxu0 }
  0xfc   :  { %v137_v23 = vmax.f32 %v132_v21, 0.0 }
  0xfd   :  { %v134_v24 = vpop.f32.mrf.mxu0 }
  0xfe   :  { %v138_v25 = vpack.c.bf16 %v137_v23, %v137_v23 }
  0xff   :  { %v562_v26 = vpop.f32.mrf.mxu0 }
 0x100   :  { %580 = vmatmul.mubr.bf16.vlgmr.msra.gmra.mxu1 %v138_v25 }
 0x101   :  { %619 = vmatprep.mubr.msk.bf16.mxu1 %vm771_vm0, %v770_v0  ;;  %604 = vmatpush3.bf16.msra.mxu1 %v648_v29 }
 0x102   :  { %605 = vmatprep.subr.bf16.mxu1 %v770_v0 }
 0x105   :  { %606 = vmatpush3.bf16.msra.mxu1 %v649_v30 }
 0x106   :  { %607 = vmatprep.subr.bf16.mxu1 %v770_v0 }
 0x109   :  { %608 = vmatpush3.bf16.msra.mxu1 %v650_v31 }
 0x10a   :  { %609 = vmatprep.subr.bf16.mxu1 %v770_v0 }
 0x10d   :  { %610 = vmatpush3.bf16.msra.mxu1 %v651_v32 }
 0x10e   :  { %611 = vmatprep.subr.bf16.mxu1 %v770_v0 }
 0x111   :  { %612 = vmatpush3.bf16.msra.mxu1 %v652_v33 }
 0x112   :  { %613 = vmatprep.subr.bf16.mxu1 %v770_v0 }
 0x115   :  { %614 = vmatpush3.bf16.msra.mxu1 %v653_v34 }
 0x116   :  { %615 = vmatprep.subr.bf16.mxu1 %v770_v0 }
 0x119   :  { %616 = vmatpush3.bf16.msra.mxu1 %v654_v43 }
 0x11a   :  { %617 = vmatprep.subr.bf16.mxu1 %v770_v0 }
 0x11d   :  { %618 = vmatpush3.bf16.msra.mxu1 %v655_v44 }
 0x1c0   :  { %v244_v36 = vpop.f32.mrf.mxu1 }
 0x1c1   :  { %v245_v37 = vadd.f32 %v500_v35, %v244_v36 }
 0x1c2   :  { %v581_v38 = vpop.f32.mrf.mxu1 }
 0x1c3   :  { %v250_v39 = vmax.f32 %v245_v37, 0.0 }
 0x1c4   :  { %v247_v40 = vpop.f32.mrf.mxu1 }
 0x1c5   :  { %v251_v41 = vpack.c.bf16 %v250_v39, %v250_v39 }
 0x1c6   :  { %v582_v42 = vpop.f32.mrf.mxu1 }
 0x1c7   :  { %600 = vmatmul.mubr.bf16.vlgmr.msra.gmra.mxu0 %v251_v41 }
 0x287   :  { %v359_v46 = vpop.f32.mrf.mxu0 }
 0x288   :  { %v360_v47 = vadd.f32 %v510_v45, %v359_v46 }
 0x289   :  { %v601_v48 = vpop.f32.mrf.mxu0 }
 0x28a   :  { %v365_v49 = vmax.f32 %v360_v47, 0.0 }
 0x28b   :  { %v362_v50 = vpop.f32.mrf.mxu0 }
 0x28c   :  { %v366_v51 = vpack.c.bf16 %v365_v49, %v365_v49 }
 0x28d   :  { %v602_v52 = vpop.f32.mrf.mxu0 }
 0x28e   :  { %620 = vmatmul.mubr.bf16.vlgmr.msra.gmra.mxu1 %v366_v51 }
 0x34e   :  { %v472_v54 = vpop.f32.mrf.mxu1 }
 0x34f   :  { %v473_v55 = vadd.f32 %v519_v53, %v472_v54 }
 0x350   :  { %v621_v56 = vpop.f32.mrf.mxu1 }
 0x351   :  { %v478_v57 = vmax.f32 %v473_v55, 0.0 }
 0x352   :  { %v475_v58 = vpop.f32.mrf.mxu1 }
 0x353   :  { %v479_v59 = vpack.c.bf16 %v478_v57, %v478_v57 }
 0x354   :  { %v622_v60 = vpop.f32.mrf.mxu1 }
 0x355   :  { %480 = vst [vmem:[#allocation10] sm:$0xf] %v479_v59 }
 0x356   :  { %747 = shalt.err (!%p744_p10)
}
 0x357   :  { %490 = dma.vmem_to_hbm [thread:$0]  %s488_s27, 64, %s880_s7, [#allocation4]  }
 0x358   :  { %762 = dma.done.wait [#allocation4], 64  }
 0x359   :  { %763 = vsyncadd [#allocation4], 4294967232 }
 0x35a   :  { %494 = vsyncpa [#allocation3], 1 }
 0x35b   :  { %495 = vsyncpa [#allocation6], 1 }
 0x35c   :  { %496 = vsyncpa [#allocation9], 1 }
 0x35d   :  { %497 = vsyncpa [#allocation4], 1 }

</bundles_post_ra>
